<compile_context>
chip_gen: v6e
topology: v6e:2x2x1
jax: 0.10.0
libtpu: 0.0.40
codegen_flags: <defaults>
</compile_context>

<pallas_src>
import functools

import numpy as np
import jax
import jax.numpy as jnp
from jax.experimental import pallas as pl
from jax.experimental.pallas import tpu as pltpu


# --------------------------------------------------------------------------------------
# Generation-aware VMEM budgets (v5e/v6e: 128 MiB physical, v7x: 64 MiB per TC).
# --------------------------------------------------------------------------------------
def _vmem_budgets():
    try:
        phys = int(pltpu.get_tpu_info().vmem_capacity_bytes)
    except Exception:
        phys = 64 * 1024 * 1024           # conservative fallback (v7x per-TC VMEM)
    phys = max(phys, 32 * 1024 * 1024)
    budget = int(phys * 0.70)             # used to size tiles
    vmem_limit = int(phys * 0.85)         # scoped VMEM limit handed to Mosaic
    return budget, vmem_limit


# --------------------------------------------------------------------------------------
# Kernel 1: [CLS] embedding cross-entropy over all (teacher q, student v) pairs, q != v.
#   Teacher softmax is precomputed in XLA; kernel consumes prob_q and P = sum_q prob_q.
#   Per-(batch-tile, crop) partial losses -> both grid axes are "parallel".
# --------------------------------------------------------------------------------------
def _emb_loss_kernel(psum_ref, prob_ref, s_ref, loss_ref, *, ng, batch_total,
                     inv_student_temp):
    v = pl.program_id(1)
    is_global = jnp.where(v < ng, 1.0, 0.0).astype(jnp.float32)
    n_q = jnp.float32(ng) - is_global          # number of teacher crops pairing with v

    # effective (summed) teacher distribution for crop v: sum_{q != v} prob_q
    te_eff = psum_ref[...].astype(jnp.float32) - prob_ref[0].astype(jnp.float32) * is_global

    s = s_ref[0].astype(jnp.float32) * inv_student_temp           # (tile_b, D)
    sz = s - jnp.max(s, axis=-1, keepdims=True)
    logz = jnp.log(jnp.sum(jnp.exp(sz), axis=-1, keepdims=True))  # (tile_b, 1)

    # sum_{q!=v} sum_d -prob_q*log_softmax(s) = n_q*logZ - sum_d(te_eff*sz)
    row = logz * n_q - jnp.sum(te_eff * sz, axis=-1, keepdims=True)
    loss_ref[...] = (jnp.sum(row) * (1.0 / batch_total)).reshape(1, 1, 1)


def _choose_emb_tile_b(B, D, s_itemsize, budget):
    # per-batch-row VMEM bytes: P + prob (f32, 2 pipeline buffers each), student block
    # (2 buffers, input dtype), plus ~6 f32-wide temporaries.
    per_row = 2 * 2 * D * 4 + 2 * D * s_itemsize + 6 * D * 4
    if B * per_row <= budget or B <= 8:
        return B
    tb = int(budget // max(per_row, 1)) // 8 * 8
    tb = min(max(tb, 8), B)
    while tb >= 8 and B % tb != 0:
        tb -= 8
    if tb < 8 or B % tb != 0:
        return B            # best effort; rely on vmem_limit (B not a multiple of 8)
    return tb


def _emb_loss_pallas(psum, prob, student_emb, *, ng, inv_student_temp, budget, vmem_limit):
    nc, B, D = student_emb.shape
    tile_b = _choose_emb_tile_b(B, D, jnp.dtype(student_emb.dtype).itemsize, budget)
    grid_b = B // tile_b
    kernel = functools.partial(_emb_loss_kernel, ng=ng, batch_total=B,
                               inv_student_temp=inv_student_temp)
    loss_part = pl.pallas_call(
        kernel,
        out_shape=jax.ShapeDtypeStruct((grid_b * nc, 1, 1), jnp.float32),
        grid=(grid_b, nc),                                    # batch outer, crop inner
        in_specs=[
            pl.BlockSpec((tile_b, D), lambda bi, v: (bi, 0)),                  # P = sum_q prob_q
            pl.BlockSpec((1, tile_b, D),
                         lambda bi, v: (jnp.minimum(v, ng - 1), bi, 0)),       # prob_q (globals)
            pl.BlockSpec((1, tile_b, D), lambda bi, v: (v, bi, 0)),            # student crop v
        ],
        out_specs=pl.BlockSpec((1, 1, 1), lambda bi, v: (bi * nc + v, 0, 0)),
        compiler_params=pltpu.CompilerParams(
            dimension_semantics=("parallel", "parallel"),
            vmem_limit_bytes=vmem_limit),
    )(psum, prob, student_emb)
    return jnp.sum(loss_part)


# --------------------------------------------------------------------------------------
# Kernel 2: masked patch-token (MIM) cross-entropy, streamed over flattened tokens.
#   Per-tile partial outputs (no cross-step state) => token axis is "parallel".
#   Also accumulates sum_tokens teacher_features (for the center2 EMA update).
# --------------------------------------------------------------------------------------
def _feat_loss_kernel(scalar_ref, tf_ref, sf_ref, w_ref, c2_ref, loss_ref, fsum_ref,
                      *, total_t, ragged, inv_student_temp):
    inv_temp2 = scalar_ref[0]

    tf = tf_ref[...].astype(jnp.float32)                                # (tile_t, Dp)
    if ragged:
        i = pl.program_id(0)
        tile_t = tf.shape[0]
        tok = jax.lax.broadcasted_iota(jnp.int32, (tile_t, 1), 0) + i * tile_t
        valid = tok < total_t                                           # (tile_t, 1)
        tf = jnp.where(valid, tf, 0.0)                                  # keep fsum exact

    tz = (tf - c2_ref[...].astype(jnp.float32)) * inv_temp2
    tz = tz - jnp.max(tz, axis=-1, keepdims=True)
    te = jnp.exp(tz)
    rinv = pl.reciprocal(jnp.sum(te, axis=-1, keepdims=True), approx=False)

    s = sf_ref[...].astype(jnp.float32) * inv_student_temp
    sz = s - jnp.max(s, axis=-1, keepdims=True)
    logz = jnp.log(jnp.sum(jnp.exp(sz), axis=-1, keepdims=True))

    # sum_d prob*(logZ - sz) = logZ - rinv*sum_d(te*sz); log-softmax never materialized
    ce = logz - rinv * jnp.sum(te * sz, axis=-1, keepdims=True)         # (tile_t, 1)
    contrib = ce * w_ref[...].astype(jnp.float32)                       # (tile_t, 1)
    if ragged:
        contrib = jnp.where(valid, contrib, 0.0)

    loss_ref[...] = jnp.sum(contrib).reshape(1, 1, 1)
    fsum_ref[...] = jnp.sum(tf, axis=0, keepdims=True)[None]            # (1, 1, Dp)


def _choose_feat_tile(T, Dp, in_itemsize, budget):
    # 2 big inputs x 2 pipeline buffers + ~6 f32-wide temporaries per token row.
    per_tok = 2 * 2 * Dp * in_itemsize + 6 * Dp * 4 + 8
    tile = budget // max(per_tok, 1)
    tile = max(8, min(int(tile), 2048))
    tile = (tile // 8) * 8
    if tile >= T:
        return T
    return tile


def _feat_loss_pallas(scalars, tf_flat, sf_flat, w_flat, center2_2d, *,
                      inv_student_temp, budget, vmem_limit):
    T, Dp = tf_flat.shape
    tile_t = _choose_feat_tile(T, Dp, jnp.dtype(tf_flat.dtype).itemsize, budget)
    grid_t = (T + tile_t - 1) // tile_t
    ragged = (T % tile_t) != 0
    kernel = functools.partial(_feat_loss_kernel, total_t=T, ragged=ragged,
                               inv_student_temp=inv_student_temp)
    loss_part, fsum_part = pl.pallas_call(
        kernel,
        out_shape=(jax.ShapeDtypeStruct((grid_t, 1, 1), jnp.float32),
                   jax.ShapeDtypeStruct((grid_t, 1, Dp), jnp.float32)),
        grid=(grid_t,),
        in_specs=[
            pl.BlockSpec(memory_space=pltpu.MemorySpace.SMEM),           # [1/temp2]
            pl.BlockSpec((tile_t, Dp), lambda i: (i, 0)),                # teacher tokens
            pl.BlockSpec((tile_t, Dp), lambda i: (i, 0)),                # student tokens
            pl.BlockSpec((tile_t, 1), lambda i: (i, 0)),                 # per-token weights
            pl.BlockSpec((1, Dp), lambda i: (0, 0)),                     # center2
        ],
        out_specs=(
            pl.BlockSpec((1, 1, 1), lambda i: (i, 0, 0)),
            pl.BlockSpec((1, 1, Dp), lambda i: (i, 0, 0)),
        ),
        compiler_params=pltpu.CompilerParams(
            dimension_semantics=("parallel",),
            vmem_limit_bytes=vmem_limit),
    )(scalars, tf_flat, sf_flat, w_flat, center2_2d)
    return jnp.sum(loss_part), jnp.sum(fsum_part, axis=0)                # scalar, (1, Dp)


# --------------------------------------------------------------------------------------
# Jitted forward implementation (glue + both pallas calls + center EMA).
# --------------------------------------------------------------------------------------
def _ibot_forward(student_embedding, student_local_embedding, student_features,
                  teacher_embedding, teacher_features, student_mask,
                  center, center2, temp, temp2, *,
                  ng, nc, student_temp, lambda1, lambda2,
                  center_momentum, center_momentum2, budget, vmem_limit):
    D = teacher_embedding.shape[-1]
    N, Dp = teacher_features.shape[1], teacher_features.shape[-1]
    B = teacher_embedding.shape[0] // ng

    student_all = jnp.concatenate([student_embedding, student_local_embedding], axis=0)
    student_emb = student_all.reshape(nc, B, D)

    # ---- hoisted teacher [CLS] softmax + center-EMA sum (tiny vs. the streamed kernels)
    t_f32 = teacher_embedding.astype(jnp.float32)
    tsum = jnp.sum(t_f32, axis=0, keepdims=True)                         # (1, D)
    tz = (t_f32.reshape(ng, B, D) - center.astype(jnp.float32)[None]) / temp
    prob = jax.nn.softmax(tz, axis=-1)                                   # (ng, B, D) f32
    psum = jnp.sum(prob, axis=0)                                         # (B, D)

    # runtime scalar for kernel 2 (SMEM): [1/temp2]  -> no recompile per warmup epoch
    scalars = jnp.reshape(1.0 / temp2, (1,)).astype(jnp.float32)

    # per-token weights for the MIM loss: mask / clamp(mask_sum, 1) / B
    mask_f = student_mask.astype(jnp.float32)                            # (ng, B, N)
    msum = jnp.maximum(jnp.sum(mask_f, axis=-1, keepdims=True), 1.0)
    w = (mask_f / msum) * (1.0 / B)
    T = ng * B * N
    w_flat = w.reshape(T, 1)
    tf_flat = teacher_features.reshape(T, Dp)
    sf_flat = student_features.reshape(T, Dp)

    inv_student_temp = 1.0 / student_temp
    loss1_sum = _emb_loss_pallas(psum, prob, student_emb, ng=ng,
                                 inv_student_temp=inv_student_temp,
                                 budget=budget, vmem_limit=vmem_limit)
    loss2_sum, fsum = _feat_loss_pallas(scalars, tf_flat, sf_flat, w_flat,
                                        center2.reshape(1, Dp),
                                        inv_student_temp=inv_student_temp,
                                        budget=budget, vmem_limit=vmem_limit)

    total_loss1 = loss1_sum / (ng * (nc - 1)) * lambda1
    total_loss2 = loss2_sum / ng * lambda2
    losses = {"embedding": total_loss1, "features": total_loss2,
              "all": total_loss1 + total_loss2}

    # center EMA updates (single-device path)
    n_rows = ng * B
    embedding_center = tsum / n_rows
    new_center = center * center_momentum + embedding_center * (1.0 - center_momentum)
    features_center = fsum / (N * n_rows)
    new_center2 = (center2.reshape(1, Dp) * center_momentum2
                   + features_center * (1.0 - center_momentum2)).reshape(1, 1, Dp)
    return losses, new_center, new_center2


class IBOTLossPallas:
    """JAX/Pallas port of birder iBOTLoss (single-device path; buffers are explicit state)."""

    def __init__(self, out_dim, patch_out_dim, num_global_crops, num_local_crops,
                 warmup_teacher_temp, teacher_temp, warmup_teacher_temp2, teacher_temp2,
                 warmup_teacher_temp_epochs, epochs, student_temp, center_momentum,
                 center_momentum2, lambda1, lambda2, mim_start_epoch):
        self.student_temp = student_temp
        self.center_momentum = center_momentum
        self.center_momentum2 = center_momentum2
        self.num_global_crops = num_global_crops
        self.num_crops = num_global_crops + num_local_crops
        self.lambda1 = lambda1
        self.lambda2 = lambda2
        self.out_dim = out_dim
        self.patch_out_dim = patch_out_dim
        self.center = jnp.zeros((1, out_dim), dtype=jnp.float32)
        self.center2 = jnp.zeros((1, 1, patch_out_dim), dtype=jnp.float32)
        self.teacher_temp_schedule = np.concatenate((
            np.linspace(warmup_teacher_temp, teacher_temp, warmup_teacher_temp_epochs),
            np.ones(epochs - warmup_teacher_temp_epochs) * teacher_temp))
        if mim_start_epoch == 0:
            self.teacher_temp2_schedule = np.concatenate((
                np.linspace(warmup_teacher_temp2, teacher_temp2, warmup_teacher_temp_epochs),
                np.ones(epochs - warmup_teacher_temp_epochs) * teacher_temp2))
        else:
            self.teacher_temp2_schedule = np.concatenate((
                np.ones(mim_start_epoch) * warmup_teacher_temp2,
                np.linspace(warmup_teacher_temp2, teacher_temp2, warmup_teacher_temp_epochs),
                np.ones(epochs - warmup_teacher_temp_epochs - mim_start_epoch) * teacher_temp2))
        budget, vmem_limit = _vmem_budgets()
        # One compile regardless of the epoch temperature (temps are runtime values).
        self._impl = jax.jit(functools.partial(
            _ibot_forward, ng=self.num_global_crops, nc=self.num_crops,
            student_temp=student_temp, lambda1=lambda1, lambda2=lambda2,
            center_momentum=center_momentum, center_momentum2=center_momentum2,
            budget=budget, vmem_limit=vmem_limit))

    def forward(self, student_embedding, student_features, teacher_embedding,
                teacher_features, student_local_embedding, student_mask, epoch):
        temp = jnp.float32(self.teacher_temp_schedule[epoch])
        temp2 = jnp.float32(self.teacher_temp2_schedule[epoch])
        # TODO(synk): distributed all_reduce path of update_center is not implemented (single device).
        losses, new_center, new_center2 = self._impl(
            student_embedding, student_local_embedding, student_features,
            teacher_embedding, teacher_features, student_mask,
            self.center, self.center2, temp, temp2)
        self.center = new_center
        self.center2 = new_center2
        return losses


# --------------------------------------------------------------------------------------
# Pure-JAX reference (mirrors the PyTorch forward) for correctness checking.
# --------------------------------------------------------------------------------------
def reference_forward(module, se, sf, te, tf, sle, sm, epoch, center, center2):
    ng, nc = module.num_global_crops, module.num_crops
    se_all = jnp.concatenate([se, sle], axis=0) / module.student_temp
    se_n = jnp.split(se_all, nc, axis=0)
    sf_s = sf / module.student_temp
    sf_n = jnp.split(sf_s, ng, axis=0)
    temp = module.teacher_temp_schedule[epoch]
    temp2 = module.teacher_temp2_schedule[epoch]
    tec = jax.nn.softmax((te - center) / temp, axis=-1)
    tec_n = jnp.split(tec, ng, axis=0)
    tfc = jax.nn.softmax((tf - center2) / temp2, axis=-1)
    tfc_n = jnp.split(tfc, ng, axis=0)
    tl1, tl2, n1, n2 = 0.0, 0.0, 0, 0
    for q in range(ng):
        for v in range(nc):
            if v == q:
                loss2 = jnp.sum(-tfc_n[q] * jax.nn.log_softmax(sf_n[v], axis=-1), axis=-1)
                mask = sm[v].astype(jnp.float32)
                loss2 = jnp.sum(loss2 * mask, axis=-1) / jnp.maximum(jnp.sum(mask, axis=-1), 1.0)
                tl2 = tl2 + jnp.mean(loss2)
                n2 += 1
            else:
                loss1 = jnp.sum(-tec_n[q] * jax.nn.log_softmax(se_n[v], axis=-1), axis=-1)
                tl1 = tl1 + jnp.mean(loss1)
                n1 += 1
    tl1 = tl1 / n1 * module.lambda1
    tl2 = tl2 / n2 * module.lambda2
    new_center = center * module.center_momentum + \
        (jnp.sum(te, axis=0, keepdims=True) / te.shape[0]) * (1 - module.center_momentum)
    new_center2 = center2 * module.center_momentum2 + \
        (jnp.sum(jnp.mean(tf, axis=1), axis=0, keepdims=True) / tf.shape[0]) * (1 - module.center_momentum2)
    return {"embedding": tl1, "features": tl2, "all": tl1 + tl2}, new_center, new_center2


if __name__ == "__main__":
    # Small deterministic example shapes
    ng, nl = 2, 2
    nc = ng + nl
    B = 4          # per-crop batch
    out_dim = 64
    patch_out_dim = 32
    N = 8          # patch tokens
    epoch = 1

    mod = IBOTLossPallas(
        out_dim=out_dim, patch_out_dim=patch_out_dim,
        num_global_crops=ng, num_local_crops=nl,
        warmup_teacher_temp=0.04, teacher_temp=0.07,
        warmup_teacher_temp2=0.04, teacher_temp2=0.07,
        warmup_teacher_temp_epochs=3, epochs=10,
        student_temp=0.1, center_momentum=0.9, center_momentum2=0.9,
        lambda1=1.0, lambda2=1.0, mim_start_epoch=0)

    key = jax.random.PRNGKey(0)
    k = jax.random.split(key, 8)
    student_embedding = jax.random.normal(k[0], (ng * B, out_dim), jnp.float32)
    student_local_embedding = jax.random.normal(k[1], (nl * B, out_dim), jnp.float32)
    teacher_embedding = jax.random.normal(k[2], (ng * B, out_dim), jnp.float32)
    student_features = jax.random.normal(k[3], (ng * B, N, patch_out_dim), jnp.float32)
    teacher_features = jax.random.normal(k[4], (ng * B, N, patch_out_dim), jnp.float32)
    student_mask = jax.random.bernoulli(k[5], 0.5, (ng, B, N))
    # Deterministic non-zero centers so the centering path is exercised.
    mod.center = 0.1 * jax.random.normal(k[6], (1, out_dim), jnp.float32)
    mod.center2 = 0.1 * jax.random.normal(k[7], (1, 1, patch_out_dim), jnp.float32)
    init_center, init_center2 = mod.center, mod.center2

    out = mod.forward(student_embedding, student_features, teacher_embedding,
                      teacher_features, student_local_embedding, student_mask, epoch)
    jax.block_until_ready(out["all"])
    jax.block_until_ready(mod.center)
    jax.block_until_ready(mod.center2)

    ref, ref_center, ref_center2 = reference_forward(
        mod, student_embedding, student_features, teacher_embedding, teacher_features,
        student_local_embedding, student_mask, epoch, init_center, init_center2)

    np.testing.assert_allclose(np.asarray(out["embedding"]), np.asarray(ref["embedding"]), rtol=5e-4, atol=1e-5)
    np.testing.assert_allclose(np.asarray(out["features"]), np.asarray(ref["features"]), rtol=5e-4, atol=1e-5)
    np.testing.assert_allclose(np.asarray(out["all"]), np.asarray(ref["all"]), rtol=5e-4, atol=1e-5)
    np.testing.assert_allclose(np.asarray(mod.center), np.asarray(ref_center), rtol=1e-4, atol=1e-5)
    np.testing.assert_allclose(np.asarray(mod.center2), np.asarray(ref_center2), rtol=1e-4, atol=1e-5)

    print("KERNEL_OK")
</pallas_src>

<mosaic_0001>
module attributes {stable_mosaic.version = 11 : i64} {
  func.func @_feat_loss_kernel(%arg0: i32, %arg1: memref<1xf32, #tpu.memory_space<smem>>, %arg2: memref<64x32xf32, #tpu.memory_space<vmem>>, %arg3: memref<64x32xf32, #tpu.memory_space<vmem>>, %arg4: memref<64x1xf32, #tpu.memory_space<vmem>>, %arg5: memref<1x32xf32, #tpu.memory_space<vmem>>, %arg6: memref<1x1x1xf32, #tpu.memory_space<vmem>>, %arg7: memref<1x1x32xf32, #tpu.memory_space<vmem>>) attributes {dimension_semantics = [#tpu.dimension_semantics<parallel>], iteration_bounds = array<i64: 1>, scalar_prefetch = 0 : i64, scratch_operands = 0 : i64, tpu.core_type = #tpu.core_type<tc>, window_params = [{transform_indices = @transform_0, window_bounds = array<i64: 1>}, {transform_indices = @transform_1, window_bounds = array<i64: 64, 32>}, {transform_indices = @transform_2, window_bounds = array<i64: 64, 32>}, {transform_indices = @transform_3, window_bounds = array<i64: 64, 1>}, {pipeline_mode = #tpu.pipeline_mode<synchronous>, transform_indices = @transform_4, window_bounds = array<i64: 1, 32>}, {transform_indices = @transform_5, window_bounds = array<i64: 1, 1, 1>}, {transform_indices = @transform_6, window_bounds = array<i64: 1, 1, 32>}]} {
    %c0 = arith.constant 0 : index
    %0 = memref.load %arg1[%c0] : memref<1xf32, #tpu.memory_space<smem>>
    %c0_0 = arith.constant 0 : index
    %c0_1 = arith.constant 0 : index
    %1 = vector.load %arg2[%c0_0, %c0_1] : memref<64x32xf32, #tpu.memory_space<vmem>>, vector<64x32xf32>
    %c0_2 = arith.constant 0 : index
    %c0_3 = arith.constant 0 : index
    %2 = vector.load %arg5[%c0_2, %c0_3] : memref<1x32xf32, #tpu.memory_space<vmem>>, vector<1x32xf32>
    %3 = vector.broadcast %2 : vector<1x32xf32> to vector<64x32xf32>
    %4 = arith.subf %1, %3 : vector<64x32xf32>
    %5 = vector.broadcast %0 : f32 to vector<64x32xf32>
    %6 = arith.mulf %4, %5 : vector<64x32xf32>
    %cst = arith.constant dense<0xFF800000> : vector<64xf32>
    %7 = vector.multi_reduction <maximumf>, %6, %cst [1] : vector<64x32xf32> to vector<64xf32>
    %8 = vector.shape_cast %7 : vector<64xf32> to vector<64x1xf32>
    %9 = vector.broadcast %8 : vector<64x1xf32> to vector<64x32xf32>
    %10 = arith.subf %6, %9 : vector<64x32xf32>
    %11 = math.exp %10 : vector<64x32xf32>
    %cst_4 = arith.constant dense<0.000000e+00> : vector<64xf32>
    %12 = vector.multi_reduction <add>, %11, %cst_4 [1] : vector<64x32xf32> to vector<64xf32>
    %13 = vector.shape_cast %12 : vector<64xf32> to vector<64x1xf32>
    %14 = tpu.reciprocal %13 : vector<64x1xf32> -> vector<64x1xf32>
    %c0_5 = arith.constant 0 : index
    %c0_6 = arith.constant 0 : index
    %15 = vector.load %arg3[%c0_5, %c0_6] : memref<64x32xf32, #tpu.memory_space<vmem>>, vector<64x32xf32>
    %cst_7 = arith.constant 1.000000e+01 : f32
    %16 = vector.broadcast %cst_7 : f32 to vector<64x32xf32>
    %17 = arith.mulf %15, %16 : vector<64x32xf32>
    %cst_8 = arith.constant dense<0xFF800000> : vector<64xf32>
    %18 = vector.multi_reduction <maximumf>, %17, %cst_8 [1] : vector<64x32xf32> to vector<64xf32>
    %19 = vector.shape_cast %18 : vector<64xf32> to vector<64x1xf32>
    %20 = vector.broadcast %19 : vector<64x1xf32> to vector<64x32xf32>
    %21 = arith.subf %17, %20 : vector<64x32xf32>
    %22 = math.exp %21 : vector<64x32xf32>
    %cst_9 = arith.constant dense<0.000000e+00> : vector<64xf32>
    %23 = vector.multi_reduction <add>, %22, %cst_9 [1] : vector<64x32xf32> to vector<64xf32>
    %24 = vector.shape_cast %23 : vector<64xf32> to vector<64x1xf32>
    %25 = math.log %24 : vector<64x1xf32>
    %26 = arith.mulf %11, %21 : vector<64x32xf32>
    %cst_10 = arith.constant dense<0.000000e+00> : vector<64xf32>
    %27 = vector.multi_reduction <add>, %26, %cst_10 [1] : vector<64x32xf32> to vector<64xf32>
    %28 = vector.shape_cast %27 : vector<64xf32> to vector<64x1xf32>
    %29 = arith.mulf %14, %28 : vector<64x1xf32>
    %30 = arith.subf %25, %29 : vector<64x1xf32>
    %c0_11 = arith.constant 0 : index
    %c0_12 = arith.constant 0 : index
    %31 = vector.load %arg4[%c0_11, %c0_12] : memref<64x1xf32, #tpu.memory_space<vmem>>, vector<64x1xf32>
    %32 = arith.mulf %30, %31 : vector<64x1xf32>
    %33 = vector.shape_cast %32 : vector<64x1xf32> to vector<1x64x1xf32>
    %cst_13 = arith.constant dense<0.000000e+00> : vector<1xf32>
    %34 = vector.multi_reduction <add>, %33, %cst_13 [1, 2] : vector<1x64x1xf32> to vector<1xf32>
    %35 = vector.shape_cast %34 : vector<1xf32> to vector<1x1x1xf32>
    %36 = vector.extract %35[0, 0, 0] : f32 from vector<1x1x1xf32>
    %37 = vector.broadcast %36 : f32 to vector<1x1x1xf32>
    %c0_14 = arith.constant 0 : index
    %c0_15 = arith.constant 0 : index
    %c0_16 = arith.constant 0 : index
    %38 = vector.load %arg6[%c0_14, %c0_15, %c0_16] : memref<1x1x1xf32, #tpu.memory_space<vmem>>, vector<1x1x1xf32>
    tpu.vector_store %arg6[%c0_14, %c0_15, %c0_16], %37 {strides = array<i32>} : memref<1x1x1xf32, #tpu.memory_space<vmem>>, vector<1x1x1xf32>,
    %cst_17 = arith.constant dense<0.000000e+00> : vector<32xf32>
    %39 = vector.multi_reduction <add>, %1, %cst_17 [0] : vector<64x32xf32> to vector<32xf32>
    %40 = vector.shape_cast %39 : vector<32xf32> to vector<1x32xf32>
    %41 = vector.shape_cast %40 : vector<1x32xf32> to vector<1x1x32xf32>
    %c0_18 = arith.constant 0 : index
    %c0_19 = arith.constant 0 : index
    %c0_20 = arith.constant 0 : index
    %42 = vector.load %arg7[%c0_18, %c0_19, %c0_20] : memref<1x1x32xf32, #tpu.memory_space<vmem>>, vector<1x1x32xf32>
    tpu.vector_store %arg7[%c0_18, %c0_19, %c0_20], %41 {strides = array<i32>} : memref<1x1x32xf32, #tpu.memory_space<vmem>>, vector<1x1x32xf32>,
    return
  }
  func.func @transform_0(%arg0: i32) -> i32 {
    %c0_i32 = arith.constant 0 : i32
    %c0_i32_0 = arith.constant 0 : i32
    return %c0_i32 : i32
  }
  func.func @transform_1(%arg0: i32) -> (i32, i32) {
    %c0_i32 = arith.constant 0 : i32
    %c0_i32_0 = arith.constant 0 : i32
    return %arg0, %c0_i32 : i32, i32
  }
  func.func @transform_2(%arg0: i32) -> (i32, i32) {
    %c0_i32 = arith.constant 0 : i32
    %c0_i32_0 = arith.constant 0 : i32
    return %arg0, %c0_i32 : i32, i32
  }
  func.func @transform_3(%arg0: i32) -> (i32, i32) {
    %c0_i32 = arith.constant 0 : i32
    %c0_i32_0 = arith.constant 0 : i32
    return %arg0, %c0_i32 : i32, i32
  }
  func.func @transform_4(%arg0: i32) -> (i32, i32) {
    %c0_i32 = arith.constant 0 : i32
    %c0_i32_0 = arith.constant 0 : i32
    %c0_i32_1 = arith.constant 0 : i32
    return %c0_i32, %c0_i32_0 : i32, i32
  }
  func.func @transform_5(%arg0: i32) -> (i32, i32, i32) {
    %c0_i32 = arith.constant 0 : i32
    %c0_i32_0 = arith.constant 0 : i32
    %c0_i32_1 = arith.constant 0 : i32
    return %arg0, %c0_i32, %c0_i32_0 : i32, i32, i32
  }
  func.func @transform_6(%arg0: i32) -> (i32, i32, i32) {
    %c0_i32 = arith.constant 0 : i32
    %c0_i32_0 = arith.constant 0 : i32
    %c0_i32_1 = arith.constant 0 : i32
    return %arg0, %c0_i32, %c0_i32_0 : i32, i32, i32
  }
}

module attributes {stable_mosaic.version = 11 : i64} {
  func.func @_emb_loss_kernel(%arg0: i32, %arg1: i32, %arg2: memref<4x64xf32, #tpu.memory_space<vmem>>, %arg3: memref<1x4x64xf32, #tpu.memory_space<vmem>>, %arg4: memref<1x4x64xf32, #tpu.memory_space<vmem>>, %arg5: memref<1x1x1xf32, #tpu.memory_space<vmem>>) attributes {dimension_semantics = [#tpu.dimension_semantics<parallel>, #tpu.dimension_semantics<parallel>], iteration_bounds = array<i64: 1, 4>, scalar_prefetch = 0 : i64, scratch_operands = 0 : i64, tpu.core_type = #tpu.core_type<tc>, window_params = [{transform_indices = @transform_0, window_bounds = array<i64: 4, 64>}, {transform_indices = @transform_1, window_bounds = array<i64: 1, 4, 64>}, {transform_indices = @transform_2, window_bounds = array<i64: 1, 4, 64>}, {transform_indices = @transform_3, window_bounds = array<i64: 1, 1, 1>}]} {
    %c2_i32 = arith.constant 2 : i32
    %0 = arith.cmpi slt, %arg1, %c2_i32 : i32
    %cst = arith.constant 1.000000e+00 : f32
    %cst_0 = arith.constant 0.000000e+00 : f32
    %1 = arith.select %0, %cst, %cst_0 : f32
    %cst_1 = arith.constant 2.000000e+00 : f32
    %2 = arith.subf %cst_1, %1 : f32
    %c0 = arith.constant 0 : index
    %c0_2 = arith.constant 0 : index
    %3 = vector.load %arg2[%c0, %c0_2] : memref<4x64xf32, #tpu.memory_space<vmem>>, vector<4x64xf32>
    %c0_3 = arith.constant 0 : index
    %c0_4 = arith.constant 0 : index
    %c0_5 = arith.constant 0 : index
    %4 = vector.load %arg3[%c0_3, %c0_4, %c0_5] : memref<1x4x64xf32, #tpu.memory_space<vmem>>, vector<1x4x64xf32>
    %5 = vector.shape_cast %4 : vector<1x4x64xf32> to vector<4x64xf32>
    %6 = vector.broadcast %1 : f32 to vector<4x64xf32>
    %7 = arith.mulf %5, %6 : vector<4x64xf32>
    %8 = arith.subf %3, %7 : vector<4x64xf32>
    %c0_6 = arith.constant 0 : index
    %c0_7 = arith.constant 0 : index
    %c0_8 = arith.constant 0 : index
    %9 = vector.load %arg4[%c0_6, %c0_7, %c0_8] : memref<1x4x64xf32, #tpu.memory_space<vmem>>, vector<1x4x64xf32>
    %10 = vector.shape_cast %9 : vector<1x4x64xf32> to vector<4x64xf32>
    %cst_9 = arith.constant 1.000000e+01 : f32
    %11 = vector.broadcast %cst_9 : f32 to vector<4x64xf32>
    %12 = arith.mulf %10, %11 : vector<4x64xf32>
    %cst_10 = arith.constant dense<0xFF800000> : vector<4xf32>
    %13 = vector.multi_reduction <maximumf>, %12, %cst_10 [1] : vector<4x64xf32> to vector<4xf32>
    %14 = vector.shape_cast %13 : vector<4xf32> to vector<4x1xf32>
    %15 = vector.broadcast %14 : vector<4x1xf32> to vector<4x64xf32>
    %16 = arith.subf %12, %15 : vector<4x64xf32>
    %17 = math.exp %16 : vector<4x64xf32>
    %cst_11 = arith.constant dense<0.000000e+00> : vector<4xf32>
    %18 = vector.multi_reduction <add>, %17, %cst_11 [1] : vector<4x64xf32> to vector<4xf32>
    %19 = vector.shape_cast %18 : vector<4xf32> to vector<4x1xf32>
    %20 = math.log %19 : vector<4x1xf32>
    %21 = vector.broadcast %2 : f32 to vector<4x1xf32>
    %22 = arith.mulf %20, %21 : vector<4x1xf32>
    %23 = arith.mulf %8, %16 : vector<4x64xf32>
    %cst_12 = arith.constant dense<0.000000e+00> : vector<4xf32>
    %24 = vector.multi_reduction <add>, %23, %cst_12 [1] : vector<4x64xf32> to vector<4xf32>
    %25 = vector.shape_cast %24 : vector<4xf32> to vector<4x1xf32>
    %26 = arith.subf %22, %25 : vector<4x1xf32>
    %27 = vector.shape_cast %26 : vector<4x1xf32> to vector<1x4x1xf32>
    %cst_13 = arith.constant dense<0.000000e+00> : vector<1xf32>
    %28 = vector.multi_reduction <add>, %27, %cst_13 [1, 2] : vector<1x4x1xf32> to vector<1xf32>
    %29 = vector.shape_cast %28 : vector<1xf32> to vector<1x1x1xf32>
    %30 = vector.extract %29[0, 0, 0] : f32 from vector<1x1x1xf32>
    %cst_14 = arith.constant 2.500000e-01 : f32
    %31 = arith.mulf %30, %cst_14 : f32
    %32 = vector.broadcast %31 : f32 to vector<1x1x1xf32>
    %c0_15 = arith.constant 0 : index
    %c0_16 = arith.constant 0 : index
    %c0_17 = arith.constant 0 : index
    %33 = vector.load %arg5[%c0_15, %c0_16, %c0_17] : memref<1x1x1xf32, #tpu.memory_space<vmem>>, vector<1x1x1xf32>
    tpu.vector_store %arg5[%c0_15, %c0_16, %c0_17], %32 {strides = array<i32>} : memref<1x1x1xf32, #tpu.memory_space<vmem>>, vector<1x1x1xf32>,
    return
  }
  func.func @transform_0(%arg0: i32, %arg1: i32) -> (i32, i32) {
    %c0_i32 = arith.constant 0 : i32
    %c0_i32_0 = arith.constant 0 : i32
    return %arg0, %c0_i32 : i32, i32
  }
  func.func @transform_1(%arg0: i32, %arg1: i32) -> (i32, i32, i32) {
    %c1_i32 = arith.constant 1 : i32
    %0 = arith.minsi %arg1, %c1_i32 : i32
    %c0_i32 = arith.constant 0 : i32
    %c0_i32_0 = arith.constant 0 : i32
    return %0, %arg0, %c0_i32 : i32, i32, i32
  }
  func.func @transform_2(%arg0: i32, %arg1: i32) -> (i32, i32, i32) {
    %c0_i32 = arith.constant 0 : i32
    %c0_i32_0 = arith.constant 0 : i32
    return %arg1, %arg0, %c0_i32 : i32, i32, i32
  }
  func.func @transform_3(%arg0: i32, %arg1: i32) -> (i32, i32, i32) {
    %c4_i32 = arith.constant 4 : i32
    %0 = arith.muli %arg0, %c4_i32 : i32
    %1 = arith.addi %0, %arg1 : i32
    %c0_i32 = arith.constant 0 : i32
    %c0_i32_0 = arith.constant 0 : i32
    %c0_i32_1 = arith.constant 0 : i32
    return %1, %c0_i32, %c0_i32_0 : i32, i32, i32
  }
}

</mosaic_0001>

<bundles_post_ra>
// kernel: div.22
= control target key start
LH: loop header
LB: loop body
LE: loop exit
PB: predicated region body
PF: predicated region fallthrough
CT: control target
= control target key end

     0   :  { %vm8_vm0 = vcmask 31744   ;;  %s42_s0 = inlined_call_operand.vmem [shape: f32[8], index: 0, kind: input, shape index: {}]   ;;  %s43_s1 = inlined_call_operand.vmem [shape: f32[2,4], index: 1, kind: output, shape index: {}]  }
   0x1   :  { %v5_v0 = vld [vmem:[%s42_s0] sm:$0x1]  ;;  %s25_s0 = smov 124  }
   0x2   :  { %6 = vst [vmem:[#allocation1] sm:$0x1] %v5_v0 }
   0x9   :  { %v10_v1 = vld [vmem:[#allocation1] sm:$0x1]  }
   0xa   :  { %v7_v2 = vld [vmem:[#allocation1] sm:$0x1]   ;;  %11 = vrot.lane.b32.xlu0 %v10_v1, %s25_s0 }
   0xb   :  { %9 = vst.msk [vmem:[#allocation0] sm:$0x1] %vm8_vm0, %v7_v2  }
  0x7c   :  { %v12_v3 = vpop.permute.xlu0 %11  }
  0x7d   :  { %15 = vst.msk [vmem:[#allocation0 + $0x1] sm:$0x1] %vm8_vm0, %v12_v3  }
  0x84   :  { %v20_v4 = vld [vmem:[#allocation0] sm:$0x3] }
  0x85   :  { %23 = vst [vmem:[%s43_s1] sm:$0x3] %v20_v4 }

// kernel: _ibot_forward.2
= control target key start
LH: loop header
LB: loop body
LE: loop exit
PB: predicated region body
PF: predicated region fallthrough
CT: control target
= control target key end

     0   :  { %s482_s12 = smov 0   ;;  %s484_s13 = smov 0   ;;  %s528_s0 = inlined_call_operand.vmem [shape: f32[4,64], index: 0, kind: input, shape index: {}]   ;;  %s529_s1 = inlined_call_operand.vmem [shape: f32[2,4,64], index: 1, kind: input, shape index: {}]   ;;  %s530_s2 = inlined_call_operand.vmem [shape: f32[4,4,64], index: 2, kind: input, shape index: {}]   ;;  %s531_s3 = inlined_call_operand.vmem [shape: f32[4,1,1], index: 3, kind: output, shape index: {}]  }
   0x1   :  { %s486_s14 = smov 0  }
   0x2 LB: > { %s22_s15 = sadd.s32 1, %s456_s13  ;;  %p400_p0 = scmp.ge.s32.totalorder %s460_s14, 1  ;;  %s460_s14 = sphi %s486_s14, %s13_s14   ;;  %s456_s13 = sphi %s484_s13, %s533_s13   ;;  %s452_s12 = sphi %s482_s12, %s532_s12  }
   0x3   : > { %p23_p1 = scmp.ge.s32.totalorder %s22_s15, 4  ;;  %p188_p2 = scmp.lt.s32.totalorder %s460_s14, 5 }
   0x5   : > { %s535_s15 = smov (%p23_p1, %s22_s15), 0  ;;  %p189_p3 = pnand %p400_p0, %p188_p2 }
   0x6   : > { %p242_p4 = scmp.lt.s32.totalorder (!%p189_p3), %s452_s12, 3  ;;  %p231_p5 = scmp.lt.s32.totalorder (!%p189_p3), %s452_s12, 1 }
   0x7   : > { %192 = sbr.rel (%p189_p3) target bundleno = 540 (0x21c), region = 32  ;;  %p256_p6 = scmp.lt.s32.totalorder (!%p189_p3), %s452_s12, 2 }
   0xc   : > { %s500_s16 = scalar_select %p242_p4, %s452_s12, 3  ;;  %vm266_vm0 = vcmask 519168   ;;  %v259_v6 = vld [vmem:[%s528_s0] sm:$0xf]  ;;  %vm285_vm1 = vcmask 3072   ;;  %vm298_vm2 = vcmask 0  }
   0xd   : > { %s232_s21 = scalar_select %p231_p5, %s452_s12, 1 }
   0xe   : > { %s405_s17 = sshll.u32 %s500_s16, 2  ;;  %s253_s6 = scalar_lea.vmem %s531_s3, %s500_s16 }
   0xf   : > { %s248_s20 = scalar_lea.vmem %s530_s2, %s405_s17  ;;  %s537_s21 = smov (!%p231_p5, %s232_s21), 1 }
  0x10   : > { %v264_v0 = vld [vmem:[%s248_s20] sm:$0xf]  ;;  %s404_s22 = sshll.u32 %s537_s21, 2 }
  0x11   : > { %v265_v1 = vmul.f32 10.0, %v264_v0  ;;  %s257_s23 = scalar_select %p256_p6, 1.0, 0.0 }
  0x12   : > { %s239_s26 = scalar_lea.vmem %s529_s1, %s404_s22 }
  0x13   : > { %v267_v2 = vsel %vm266_vm0, %v265_v1, -inf  ;;  %v260_v3 = vld [vmem:[%s239_s26] sm:$0xf]  ;;  %v261_v4 = vstv %s257_s23  ;;  %s258_s29 = ssub.f32 2.0, %s257_s23 }
  0x14   : > { %268 = vmax.xlane.f32.xlu0 %v267_v2  ;;  %v262_v5 = vmul.f32 %v261_v4, %v260_v3 }
  0x15   : > { %v278_v17 = vstv %s258_s29 }
  0x16   : > { %v263_v7 = vsub.f32 %v259_v6, %v262_v5 }
  0x9d   : > { %v269_v8 = vpop.xlane.xlu0 %268 }
  0x9e   : > { %v270_v9 = vsub.f32 %v265_v1, %v269_v8 }
  0xa0   : > { %v271_v10 = vmul.f32 1.442695, %v270_v9  ;;  %v280_v11 = vmul.f32 %v270_v9, %v263_v7 }
  0xa2   : > { %434 = vpow2.f32 %v271_v10  ;;  %v281_v12 = vsel %vm266_vm0, %v280_v11, 0.0 }
  0xa3   : > { %282 = vadd.xlane.f32.xlu1 %v281_v12 }
  0xaf   : > { %v435_v13 = vpop.eup %434 }
  0xb0   : > { %v273_v14 = vsel %vm266_vm0, %v435_v13, 0.0 }
  0xb1   : > { %274 = vadd.xlane.f32.xlu0 %v273_v14 }
 0x12c   : > { %v283_v20 = vpop.xlane.xlu1 %282 }
 0x13a   : > { %v275_v15 = vpop.xlane.xlu0 %274 }
 0x13b   : > { %436 = vlog2.f32 %v275_v15 }
 0x148   : > { %v437_v16 = vpop.eup %436 }
 0x149   : > { %v277_v18 = vmul.f32 0.6931472, %v437_v16 }
 0x14b   : > { %v279_v19 = vmul.f32 %v278_v17, %v277_v18 }
 0x14d   : > { %v284_v21 = vsub.f32 %v279_v19, %v283_v20 }
 0x14f   : > { %v286_v22 = vsel %vm285_vm1, %v284_v21, 0.0 }
 0x150   : > { %287 = vadd.xlane.f32.xlu1 %v286_v22 }
 0x1d9   : > { %v288_v23 = vpop.xlane.xlu1 %287 }
 0x1da   : > { %v289_v24 = vrot.slane %v288_v23, 4 }
 0x1dc   : > { %v290_v25 = vadd.f32 %v289_v24, %v288_v23 }
 0x1de   : > { %v291_v26 = vrot.slane %v290_v25, 2 }
 0x1e0   : > { %v292_v27 = vadd.f32 %v291_v26, %v290_v25 }
 0x1e2   : > { %v293_v28 = vrot.slane %v292_v27, 1 }
 0x1e4   : > { %v294_v29 = vadd.f32 %v293_v28, %v292_v27 }
 0x1e6   : > { %408 = vpush %v294_v29 }
 0x217   : > { %s409_s30 = spop %408 }
 0x218   : > { %s296_s7 = smul.f32 0.25, %s409_s30 }
 0x21a   : > { %v297_v30 = vstv %s296_s7 }
 0x21b   : > { %299 = vst.msk [vmem:[%s253_s6] sm:$0x1] %vm298_vm2, %v297_v30 }
 0x21c PF: > { %s13_s14 = sadd.s32 1, %s460_s14   ;;  %s532_s12 = smov %s456_s13 }
 0x21d   : > { %p10_p7 = scmp.ge.s32.totalorder %s13_s14, 6   ;;  %s533_s13 = smov %s535_s15 }
 0x21f   :  { %12 = sbr.rel (!%p10_p7) target bundleno = 2 (0x2), region = 68 }

// kernel: _ibot_forward.3
= control target key start
LH: loop header
LB: loop body
LE: loop exit
PB: predicated region body
PF: predicated region fallthrough
CT: control target
= control target key end

     0   :  { %vm57_vm0 = vcmask 261120   ;;  %s757_s0 = inlined_call_operand.<no memory space> [shape: f32[1], index: 0, kind: input, shape index: {}]   ;;  %s758_s1 = inlined_call_operand.vmem [shape: f32[64,32], index: 1, kind: input, shape index: {}]   ;;  %s759_s2 = inlined_call_operand.vmem [shape: f32[64,32], index: 2, kind: input, shape index: {}]   ;;  %s760_s3 = inlined_call_operand.vmem [shape: f32[64,1], index: 3, kind: input, shape index: {}]   ;;  %s761_s4 = inlined_call_operand.vmem [shape: f32[1,32], index: 4, kind: input, shape index: {}]   ;;  %s762_s5 = inlined_call_operand.hbm [shape: f32[1,1,1], index: 5, kind: output, shape index: {0}]   ;;  %s763_s6 = inlined_call_operand.vmem [shape: f32[1,1,32], index: 6, kind: output, shape index: {1}]  }
   0x1   :  { %v138_v0 = vld [vmem:[%s759_s2] sm:$0xff]  ;;  %v515_v3 = vstv %s757_s0  ;;  %v139_v7 = vld [vmem:[%s759_s2 + $0x8] sm:$0xff]  ;;  %v140_v12 = vld [vmem:[%s759_s2 + $0x10] sm:$0xff] }
   0x2   :  { %v25_v1 = vld [vmem:[%s758_s1] sm:$0xff]  ;;  %v517_v4 = vmul.f32 10.0, %v138_v0  ;;  %v26_v8 = vld [vmem:[%s758_s1 + $0x8] sm:$0xff]  ;;  %v527_v9 = vmul.f32 10.0, %v139_v7  ;;  %v27_v13 = vld [vmem:[%s758_s1 + $0x10] sm:$0xff]  ;;  %v554_v23 = vmul.f32 10.0, %v140_v12 }
   0x3   :  { %v510_v2 = vld [vmem:[%s761_s4] ss:$0 sm:$0xff]  ;;  %v334_v6 = vsel %vm57_vm0, %v25_v1, 0.0  ;;  %v335_v11 = vsel %vm57_vm0, %v26_v8, 0.0  ;;  %v337_v19 = vsel %vm57_vm0, %v27_v13, 0.0  ;;  %v28_v20 = vld [vmem:[%s758_s1 + $0x18] sm:$0xff] }
   0x4   :  { %v40_v5 = vsub.f32 %v25_v1, %v510_v2  ;;  %v41_v10 = vsub.f32 %v26_v8, %v510_v2  ;;  %v154_v14 = vsel %vm57_vm0, %v517_v4, -inf  ;;  %v336_v16 = vadd.f32 %v335_v11, %v334_v6 }
   0x5   :  { %v42_v17 = vsub.f32 %v27_v13, %v510_v2  ;;  %155 = vmax.xlane.f32.xlu1 %v154_v14  ;;  %v157_v22 = vsel %vm57_vm0, %v527_v9, -inf }
   0x6   :  { %v540_v15 = vmul.f32 %v515_v3, %v40_v5  ;;  %v544_v18 = vmul.f32 %v515_v3, %v41_v10  ;;  %v338_v24 = vadd.f32 %v337_v19, %v336_v16 }
   0x8   :  { %v58_v21 = vsel %vm57_vm0, %v540_v15, -inf }
   0x9   :  { %13 = vsyncpa [#allocation4], 0  ;;  %59 = vmax.xlane.f32.xlu0 %v58_v21  ;;  %v141_v25 = vld [vmem:[%s759_s2 + $0x18] sm:$0xff]  ;;  %v339_v26 = vsel %vm57_vm0, %v28_v20, 0.0  ;;  %v61_v27 = vsel %vm57_vm0, %v544_v18, -inf  ;;  %v563_v28 = vmul.f32 %v515_v3, %v42_v17  ;;  %v43_v29 = vsub.f32 %v28_v20, %v510_v2  ;;  %v29_v31 = vld [vmem:[%s758_s1 + $0x20] sm:$0xff]  ;;  %158 = vmax.xlane.f32.xlu1 %v157_v22 }
   0xa   :  { %v340_v30 = vadd.f32 %v339_v26, %v338_v24  ;;  %v341_v32 = vsel %vm57_vm0, %v29_v31, 0.0  ;;  %v30_v33 = vld [vmem:[%s758_s1 + $0x28] sm:$0xff]  ;;  %v160_v34 = vsel %vm57_vm0, %v554_v23, -inf  ;;  %v575_v35 = vmul.f32 10.0, %v141_v25  ;;  %v31_v38 = vld [vmem:[%s758_s1 + $0x30] sm:$0xff]  ;;  %v142_v39 = vld [vmem:[%s759_s2 + $0x20] sm:$0xff] }
   0xb   :  { %v343_v37 = vsel %vm57_vm0, %v30_v33, 0.0  ;;  %v345_v40 = vsel %vm57_vm0, %v31_v38, 0.0  ;;  %v64_v41 = vsel %vm57_vm0, %v563_v28, -inf  ;;  %v588_v42 = vmul.f32 %v515_v3, %v43_v29  ;;  %v32_v45 = vld [vmem:[%s758_s1 + $0x38] sm:$0xff]  ;;  %v143_v50 = vld [vmem:[%s759_s2 + $0x28] sm:$0xff]  ;;  %v144_v58 = vld [vmem:[%s759_s2 + $0x30] sm:$0xff] }
   0xc   :  { %v342_v36 = vadd.f32 %v341_v32, %v340_v30  ;;  %v44_v43 = vsub.f32 %v29_v31, %v510_v2  ;;  %v347_v46 = vsel %vm57_vm0, %v32_v45, 0.0  ;;  %v163_v47 = vsel %vm57_vm0, %v575_v35, -inf  ;;  %v145_v5 = vld [vmem:[%s759_s2 + $0x38] sm:$0xff] }
   0xd   :  { %62 = vmax.xlane.f32.xlu0 %v61_v27  ;;  %161 = vmax.xlane.f32.xlu1 %v160_v34  ;;  %v597_v48 = vmul.f32 10.0, %v142_v39  ;;  %v67_v51 = vsel %vm57_vm0, %v588_v42, -inf  ;;  %v45_v53 = vsub.f32 %v30_v33, %v510_v2  ;;  %v610_v56 = vmul.f32 10.0, %v143_v50 }
   0xe   :  { %v344_v44 = vadd.f32 %v343_v37, %v342_v36  ;;  %v605_v52 = vmul.f32 %v515_v3, %v44_v43  ;;  %v46_v61 = vsub.f32 %v31_v38, %v510_v2  ;;  %v623_v0 = vmul.f32 10.0, %v144_v58 }
   0xf   :  { %v166_v55 = vsel %vm57_vm0, %v597_v48, -inf  ;;  %v618_v60 = vmul.f32 %v515_v3, %v45_v53  ;;  %v169_v63 = vsel %vm57_vm0, %v610_v56, -inf  ;;  %v47_v8 = vsub.f32 %v32_v45, %v510_v2 }
  0x10   :  { %v346_v49 = vadd.f32 %v345_v40, %v344_v44  ;;  %v70_v59 = vsel %vm57_vm0, %v605_v52, -inf  ;;  %v631_v7 = vmul.f32 %v515_v3, %v46_v61  ;;  %v172_v11 = vsel %vm57_vm0, %v623_v0, -inf }
  0x11   :  { %65 = vmax.xlane.f32.xlu0 %v64_v41  ;;  %164 = vmax.xlane.f32.xlu1 %v163_v47  ;;  %v73_v6 = vsel %vm57_vm0, %v618_v60, -inf  ;;  %v636_v13 = vmul.f32 10.0, %v145_v5  ;;  %vm355_vm1 = vcmask 253952   ;;  %v641_v16 = vmul.f32 %v515_v3, %v47_v8 }
  0x12   :  { %v348_v54 = vadd.f32 %v347_v46, %v346_v49  ;;  %v76_v14 = vsel %vm57_vm0, %v631_v7, -inf  ;;  %vm306_vm2 = vcmask 7168   ;;  %vm332_vm3 = vcmask 0  }
  0x13   :  { %v175_v2 = vsel %vm57_vm0, %v636_v13, -inf  ;;  %v79_v19 = vsel %vm57_vm0, %v641_v16, -inf }
  0x14   :  { %v349_v57 = vrot.slane %v348_v54, 4 }
  0x15   :  { %68 = vmax.xlane.f32.xlu0 %v67_v51  ;;  %167 = vmax.xlane.f32.xlu1 %v166_v55 }
  0x16   :  { %v350_v62 = vadd.f32 %v349_v57, %v348_v54 }
  0x18   :  { %v351_v1 = vrot.slane %v350_v62, 2 }
  0x19   :  { %71 = vmax.xlane.f32.xlu0 %v70_v59  ;;  %170 = vmax.xlane.f32.xlu1 %v169_v63 }
  0x1a   :  { %v352_v10 = vadd.f32 %v351_v1, %v350_v62 }
  0x1c   :  { %v353_v12 = vrot.slane %v352_v10, 1 }
  0x1d   :  { %74 = vmax.xlane.f32.xlu0 %v73_v6  ;;  %173 = vmax.xlane.f32.xlu1 %v172_v11 }
  0x1e   :  { %v354_v17 = vadd.f32 %v353_v12, %v352_v10 }
  0x20   :  { %356 = vst.msk [vmem:[%s763_s6] sm:$0x1] %vm355_vm1, %v354_v17 }
  0x21   :  { %77 = vmax.xlane.f32.xlu0 %v76_v14  ;;  %176 = vmax.xlane.f32.xlu1 %v175_v2 }
  0x25   :  { %80 = vmax.xlane.f32.xlu0 %v79_v19 }
  0x8e   :  { %v156_v20 = vpop.xlane.xlu1 %155 }
  0x8f   :  { %v651_v21 = vsub.f32 %v517_v4, %v156_v20 }
  0x91   :  { %v186_v22 = vmul.f32 1.442695, %v651_v21 }
  0x92   :  { %v60_v3 = vpop.xlane.xlu0 %59  ;;  %v159_v25 = vpop.xlane.xlu1 %158 }
  0x93   :  { %v82_v24 = vsub.f32 %v540_v15, %v60_v3  ;;  %379 = vpow2.f32 %v186_v22  ;;  %v656_v27 = vsub.f32 %v527_v9, %v159_v25 }
  0x95   :  { %v90_v26 = vmul.f32 1.442695, %v82_v24  ;;  %v188_v30 = vmul.f32 1.442695, %v656_v27 }
  0x96   :  { %v63_v29 = vpop.xlane.xlu0 %62  ;;  %v162_v31 = vpop.xlane.xlu1 %161 }
  0x97   :  { %381 = vpow2.f32 %v90_v26  ;;  %v660_v4 = vsub.f32 %v554_v23, %v162_v31  ;;  %v83_v37 = vsub.f32 %v544_v18, %v63_v29 }
  0x98   :  { %383 = vpow2.f32 %v188_v30 }
  0x99   :  { %v190_v33 = vmul.f32 1.442695, %v660_v4  ;;  %v92_v44 = vmul.f32 1.442695, %v83_v37 }
  0x9a   :  { %v66_v32 = vpop.xlane.xlu0 %65  ;;  %v165_v34 = vpop.xlane.xlu1 %164 }
  0x9b   :  { %v84_v15 = vsub.f32 %v563_v28, %v66_v32  ;;  %385 = vpow2.f32 %v190_v33  ;;  %v665_v9 = vsub.f32 %v575_v35, %v165_v34 }
  0x9d   :  { %v94_v36 = vmul.f32 1.442695, %v84_v15  ;;  %v192_v39 = vmul.f32 1.442695, %v665_v9 }
  0x9e   :  { %v69_v38 = vpop.xlane.xlu0 %68  ;;  %v168_v40 = vpop.xlane.xlu1 %167 }
  0x9f   :  { %387 = vpow2.f32 %v94_v36  ;;  %v85_v23 = vsub.f32 %v588_v42, %v69_v38  ;;  %v671_v43 = vsub.f32 %v597_v48, %v168_v40 }
  0xa0   :  { %389 = vpow2.f32 %v192_v39  ;;  %v380_v28 = vpop.eup %379 }
  0xa1   :  { %v96_v41 = vmul.f32 1.442695, %v85_v23  ;;  %v194_v35 = vmul.f32 1.442695, %v671_v43  ;;  %v202_v46 = vsel %vm57_vm0, %v380_v28, 0.0 }
  0xa2   :  { %v72_v45 = vpop.xlane.xlu0 %71  ;;  %203 = vadd.xlane.f32.xlu0 %v202_v46  ;;  %v171_v42 = vpop.xlane.xlu1 %170 }
  0xa3   :  { %391 = vpow2.f32 %v96_v41  ;;  %v86_v18 = vsub.f32 %v605_v52, %v72_v45  ;;  %v679_v50 = vsub.f32 %v610_v56, %v171_v42 }
  0xa4   :  { %v676_v47 = vpop.eup %381  ;;  %393 = vpow2.f32 %v194_v35 }
  0xa5   :  { %v98_v49 = vmul.f32 1.442695, %v86_v18  ;;  %v384_v48 = vpop.eup %383  ;;  %395 = vpow2.f32 %v92_v44  ;;  %v106_v53 = vsel %vm57_vm0, %v676_v47, 0.0  ;;  %v196_v55 = vmul.f32 1.442695, %v679_v50 }
  0xa6   :  { %v75_v51 = vpop.xlane.xlu0 %74  ;;  %v205_v54 = vsel %vm57_vm0, %v384_v48, 0.0  ;;  %107 = vadd.xlane.f32.xlu0 %v106_v53  ;;  %v174_v57 = vpop.xlane.xlu1 %173  ;;  %v242_v39 = vmul.f32 %v676_v47, %v651_v21 }
  0xa7   :  { %397 = vpow2.f32 %v98_v49  ;;  %v87_v52 = vsub.f32 %v618_v60, %v75_v51  ;;  %206 = vadd.xlane.f32.xlu1 %v205_v54  ;;  %v687_v56 = vsub.f32 %v623_v0, %v174_v57 }
  0xa8   :  { %399 = vpow2.f32 %v196_v55  ;;  %v386_v59 = vpop.eup %385  ;;  %v250_v40 = vsel %vm57_vm0, %v242_v39, 0.0 }
  0xa9   :  { %v100_v58 = vmul.f32 1.442695, %v87_v52  ;;  %v208_v63 = vsel %vm57_vm0, %v386_v59, 0.0  ;;  %v198_v60 = vmul.f32 1.442695, %v687_v56 }
  0xaa   :  { %v78_v61 = vpop.xlane.xlu0 %77  ;;  %v177_v5 = vpop.xlane.xlu1 %176 }
  0xab   :  { %401 = vpow2.f32 %v100_v58  ;;  %v88_v62 = vsub.f32 %v631_v7, %v78_v61  ;;  %209 = vadd.xlane.f32.xlu1 %v208_v63  ;;  %v185_v10 = vsub.f32 %v636_v13, %v177_v5 }
  0xac   :  { %v388_v1 = vpop.eup %387  ;;  %403 = vpow2.f32 %v198_v60 }
  0xad   :  { %v102_v6 = vmul.f32 1.442695, %v88_v62  ;;  %v112_v8 = vsel %vm57_vm0, %v388_v1, 0.0  ;;  %v390_v0 = vpop.eup %389  ;;  %v200_v14 = vmul.f32 1.442695, %v185_v10  ;;  %v244_v41 = vmul.f32 %v388_v1, %v660_v4 }
  0xae   :  { %113 = vadd.xlane.f32.xlu0 %v112_v8  ;;  %v81_v11 = vpop.xlane.xlu0 %80  ;;  %v211_v7 = vsel %vm57_vm0, %v390_v0, 0.0 }
  0xaf   :  { %405 = vpow2.f32 %v102_v6  ;;  %v89_v12 = vsub.f32 %v641_v16, %v81_v11  ;;  %212 = vadd.xlane.f32.xlu1 %v211_v7  ;;  %v256_v45 = vsel %vm57_vm0, %v244_v41, 0.0 }
  0xb0   :  { %v392_v17 = vpop.eup %391  ;;  %407 = vpow2.f32 %v200_v14 }
  0xb1   :  { %v104_v2 = vmul.f32 1.442695, %v89_v12  ;;  %v115_v19 = vsel %vm57_vm0, %v392_v17, 0.0  ;;  %v394_v20 = vpop.eup %393  ;;  %v245_v44 = vmul.f32 %v392_v17, %v665_v9  ;;  %v290_v12 = vld [vmem:[%s760_s3] sm:$0xff] }
  0xb2   :  { %116 = vadd.xlane.f32.xlu0 %v115_v19  ;;  %v396_v3 = vpop.eup %395  ;;  %v214_v13 = vsel %vm57_vm0, %v394_v20, 0.0 }
  0xb3   :  { %409 = vpow2.f32 %v104_v2  ;;  %215 = vadd.xlane.f32.xlu1 %v214_v13  ;;  %v109_v25 = vsel %vm57_vm0, %v396_v3, 0.0  ;;  %v243_v23 = vmul.f32 %v396_v3, %v656_v27  ;;  %v259_v21 = vsel %vm57_vm0, %v245_v44, 0.0  ;;  %v291_v3 = vld [vmem:[%s760_s3 + $0x8] sm:$0xff] }
  0xb4   :  { %v398_v22 = vpop.eup %397 }
  0xb5   :  { %v118_v24 = vsel %vm57_vm0, %v398_v22, 0.0  ;;  %v400_v16 = vpop.eup %399  ;;  %v253_v28 = vsel %vm57_vm0, %v243_v23, 0.0  ;;  %v246_v35 = vmul.f32 %v398_v22, %v671_v43 }
  0xb6   :  { %119 = vadd.xlane.f32.xlu0 %v118_v24  ;;  %v217_v30 = vsel %vm57_vm0, %v400_v16, 0.0 }
  0xb7   :  { %110 = vadd.xlane.f32.xlu1 %v109_v25  ;;  %v262_v18 = vsel %vm57_vm0, %v246_v35, 0.0 }
  0xb8   :  { %v402_v26 = vpop.eup %401 }
  0xb9   :  { %v121_v29 = vsel %vm57_vm0, %v402_v26, 0.0  ;;  %v404_v31 = vpop.eup %403  ;;  %v247_v27 = vmul.f32 %v402_v26, %v679_v50 }
  0xba   :  { %122 = vadd.xlane.f32.xlu0 %v121_v29  ;;  %v220_v15 = vsel %vm57_vm0, %v404_v31, 0.0 }
  0xbb   :  { %218 = vadd.xlane.f32.xlu1 %v217_v30  ;;  %v265_v46 = vsel %vm57_vm0, %v247_v27, 0.0  ;;  %v292_v30 = vld [vmem:[%s760_s3 + $0x10] sm:$0xff] }
  0xbc   :  { %v406_v32 = vpop.eup %405 }
  0xbd   :  { %v124_v33 = vsel %vm57_vm0, %v406_v32, 0.0  ;;  %v408_v34 = vpop.eup %407  ;;  %v248_v4 = vmul.f32 %v406_v32, %v687_v56 }
  0xbe   :  { %125 = vadd.xlane.f32.xlu0 %v124_v33  ;;  %v223_v38 = vsel %vm57_vm0, %v408_v34, 0.0 }
  0xbf   :  { %221 = vadd.xlane.f32.xlu1 %v220_v15  ;;  %v268_v9 = vsel %vm57_vm0, %v248_v4, 0.0 }
  0xc0   :  { %v410_v36 = vpop.eup %409 }
  0xc1   :  { %v127_v37 = vsel %vm57_vm0, %v410_v36, 0.0  ;;  %v249_v47 = vmul.f32 %v410_v36, %v185_v10 }
  0xc2   :  { %128 = vadd.xlane.f32.xlu0 %v127_v37 }
  0xc3   :  { %224 = vadd.xlane.f32.xlu1 %v223_v38  ;;  %v271_v43 = vsel %vm57_vm0, %v249_v47, 0.0  ;;  %v293_v38 = vld [vmem:[%s760_s3 + $0x18] sm:$0xff] }
  0xc6   :  { %251 = vadd.xlane.f32.xlu0 %v250_v40 }
  0xc7   :  { %254 = vadd.xlane.f32.xlu1 %v253_v28 }
  0xca   :  { %257 = vadd.xlane.f32.xlu0 %v256_v45 }
  0xcb   :  { %260 = vadd.xlane.f32.xlu1 %v259_v21 }
  0xce   :  { %263 = vadd.xlane.f32.xlu0 %v262_v18 }
  0xcf   :  { %266 = vadd.xlane.f32.xlu1 %v265_v46 }
  0xd2   :  { %269 = vadd.xlane.f32.xlu0 %v268_v9 }
  0xd3   :  { %272 = vadd.xlane.f32.xlu1 %v271_v43  ;;  %v294_v43 = vld [vmem:[%s760_s3 + $0x20] sm:$0xff] }
 0x12b   :  { %v204_v42 = vpop.xlane.xlu0 %203 }
 0x12c   :  { %411 = vlog2.f32 %v204_v42 }
 0x12f   :  { %v108_v48 = vpop.xlane.xlu0 %107 }
 0x130   :  { %v207_v49 = vpop.xlane.xlu1 %206 }
 0x131   :  { %413 = vlog2.f32 %v207_v49 }
 0x132   :  { %415 = vrcp.f32 %v108_v48 }
 0x134   :  { %v210_v50 = vpop.xlane.xlu1 %209 }
 0x135   :  { %417 = vlog2.f32 %v210_v50 }
 0x137   :  { %v114_v51 = vpop.xlane.xlu0 %113 }
 0x138   :  { %v213_v53 = vpop.xlane.xlu1 %212 }
 0x139   :  { %v412_v63 = vpop.eup %411 }
 0x13a   :  { %v227_v10 = vmul.f32 0.6931472, %v412_v63 }
 0x13b   :  { %v117_v52 = vpop.xlane.xlu0 %116 }
 0x13c   :  { %v216_v54 = vpop.xlane.xlu1 %215 }
 0x13e   :  { %v414_v1 = vpop.eup %413 }
 0x13f   :  { %v120_v55 = vpop.xlane.xlu0 %119  ;;  %v416_v5 = vpop.eup %415  ;;  %v229_v17 = vmul.f32 0.6931472, %v414_v1 }
 0x140   :  { %v111_v57 = vpop.xlane.xlu1 %110 }
 0x141   :  { %419 = vrcp.f32 %v111_v57 }
 0x142   :  { %421 = vrcp.f32 %v114_v51  ;;  %v418_v8 = vpop.eup %417  ;;  %v295_v51 = vld [vmem:[%s760_s3 + $0x28] sm:$0xff] }
 0x143   :  { %v123_v58 = vpop.xlane.xlu0 %122  ;;  %423 = vlog2.f32 %v213_v53  ;;  %v231_v24 = vmul.f32 0.6931472, %v418_v8  ;;  %v297_v8 = vld [vmem:[%s760_s3 + $0x38] sm:$0xff] }
 0x144   :  { %v219_v56 = vpop.xlane.xlu1 %218  ;;  %425 = vrcp.f32 %v117_v52 }
 0x145   :  { %427 = vlog2.f32 %v216_v54 }
 0x146   :  { %429 = vrcp.f32 %v120_v55 }
 0x147   :  { %v126_v59 = vpop.xlane.xlu0 %125  ;;  %431 = vlog2.f32 %v219_v56 }
 0x148   :  { %v222_v61 = vpop.xlane.xlu1 %221  ;;  %433 = vrcp.f32 %v123_v58 }
 0x149   :  { %435 = vlog2.f32 %v222_v61  ;;  %v296_v61 = vld [vmem:[%s760_s3 + $0x30] sm:$0xff]  ;;  %s465_s3 = smov [#allocation3]  }
 0x14a   :  { %437 = vrcp.f32 %v126_v59  ;;  %s363_s20 = sshll.u32 %s465_s3, 4  ;;  %s364_s20 = int_to_ptr.vmem [resolvable:$true] %s363_s20 }
 0x14b   :  { %v129_v62 = vpop.xlane.xlu0 %128  ;;  %s443_s22 = scalar_lea.vmem %s364_s20, 16  ;;  %s447_s23 = scalar_lea.vmem %s364_s20, 32 }
 0x14c   :  { %v225_v60 = vpop.xlane.xlu1 %224  ;;  %p444_p0 = scmp.ne.s32.totalorder %s364_s20, %s443_s22  ;;  %p448_p1 = scmp.lt.s32.totalorder %s364_s20, %s364_s20 }
 0x14d   :  { %439 = vlog2.f32 %v225_v60  ;;  %p449_p2 = scmp.lt.s32.totalorder %s447_s23, %s443_s22 }
 0x14e   :  { %441 = vrcp.f32 %v129_v62  ;;  %v420_v11 = vpop.eup %419 }
 0x14f   :  { %v252_v6 = vpop.xlane.xlu0 %251  ;;  %v422_v14 = vpop.eup %421  ;;  %p450_p3 = por %p449_p2, %p448_p1 }
 0x150   :  { %v274_v0 = vmul.f32 %v416_v5, %v252_v6  ;;  %v255_v7 = vpop.xlane.xlu1 %254  ;;  %v424_v20 = vpop.eup %423 }
 0x151   :  { %v275_v19 = vmul.f32 %v420_v11, %v255_v7  ;;  %v426_v22 = vpop.eup %425  ;;  %v233_v33 = vmul.f32 0.6931472, %v424_v20  ;;  %p451_p4 = pnand %p450_p3, %p444_p0 }
 0x152   :  { %v282_v2 = vsub.f32 %v227_v10, %v274_v0  ;;  %v428_v29 = vpop.eup %427 }
 0x153   :  { %v258_v13 = vpop.xlane.xlu0 %257  ;;  %v283_v25 = vsub.f32 %v229_v17, %v275_v19  ;;  %v430_v32 = vpop.eup %429  ;;  %v235_v35 = vmul.f32 0.6931472, %v428_v29 }
 0x154   :  { %v298_v16 = vmul.f32 %v290_v12, %v282_v2  ;;  %v276_v26 = vmul.f32 %v422_v14, %v258_v13  ;;  %v261_v31 = vpop.xlane.xlu1 %260  ;;  %v432_v37 = vpop.eup %431 }
 0x155   :  { %v299_v15 = vmul.f32 %v291_v3, %v283_v25  ;;  %v277_v36 = vmul.f32 %v426_v22, %v261_v31  ;;  %v434_v23 = vpop.eup %433  ;;  %v237_v46 = vmul.f32 0.6931472, %v432_v37 }
 0x156   :  { %v284_v34 = vsub.f32 %v231_v24, %v276_v26  ;;  %v307_v40 = vsel %vm306_vm2, %v298_v16, 0.0  ;;  %v436_v45 = vpop.eup %435 }
 0x157   :  { %v264_v39 = vpop.xlane.xlu0 %263  ;;  %v308_v41 = vsel %vm306_vm2, %v299_v15, 0.0  ;;  %v285_v44 = vsub.f32 %v233_v33, %v277_v36  ;;  %v438_v4 = vpop.eup %437  ;;  %v239_v52 = vmul.f32 0.6931472, %v436_v45 }
 0x158   :  { %v300_v28 = vmul.f32 %v292_v30, %v284_v34  ;;  %v309_v21 = vadd.f32 %v308_v41, %v307_v40  ;;  %v278_v27 = vmul.f32 %v430_v32, %v264_v39  ;;  %v267_v18 = vpop.xlane.xlu1 %266 }
 0x159   :  { %v301_v9 = vmul.f32 %v293_v38, %v285_v44  ;;  %v279_v42 = vmul.f32 %v434_v23, %v267_v18 }
 0x15a   :  { %v310_v47 = vsel %vm306_vm2, %v300_v28, 0.0  ;;  %v440_v49 = vpop.eup %439  ;;  %v286_v50 = vsub.f32 %v235_v35, %v278_v27 }
 0x15b   :  { %v311_v48 = vadd.f32 %v310_v47, %v309_v21  ;;  %v270_v53 = vpop.xlane.xlu0 %269  ;;  %v312_v54 = vsel %vm306_vm2, %v301_v9, 0.0  ;;  %v287_v55 = vsub.f32 %v237_v46, %v279_v42  ;;  %v442_v58 = vpop.eup %441  ;;  %v241_v63 = vmul.f32 0.6931472, %v440_v49 }
 0x15c   :  { %v280_v57 = vmul.f32 %v438_v4, %v270_v53  ;;  %v302_v59 = vmul.f32 %v294_v43, %v286_v50  ;;  %v273_v62 = vpop.xlane.xlu1 %272 }
 0x15d   :  { %v313_v56 = vadd.f32 %v312_v54, %v311_v48  ;;  %v303_v60 = vmul.f32 %v295_v51, %v287_v55  ;;  %v281_v5 = vmul.f32 %v442_v58, %v273_v62 }
 0x15e   :  { %v288_v1 = vsub.f32 %v239_v52, %v280_v57  ;;  %v314_v6 = vsel %vm306_vm2, %v302_v59, 0.0 }
 0x15f   :  { %v289_v0 = vsub.f32 %v241_v63, %v281_v5  ;;  %v315_v11 = vadd.f32 %v314_v6, %v313_v56  ;;  %v316_v12 = vsel %vm306_vm2, %v303_v60, 0.0 }
 0x160   :  { %v304_v10 = vmul.f32 %v296_v61, %v288_v1 }
 0x161   :  { %v305_v7 = vmul.f32 %v297_v8, %v289_v0  ;;  %v317_v14 = vadd.f32 %v316_v12, %v315_v11 }
 0x162   :  { %v318_v17 = vsel %vm306_vm2, %v304_v10, 0.0 }
 0x163   :  { %v319_v2 = vadd.f32 %v318_v17, %v317_v14  ;;  %v320_v19 = vsel %vm306_vm2, %v305_v7, 0.0 }
 0x165   :  { %v321_v20 = vadd.f32 %v320_v19, %v319_v2 }
 0x167   :  { %322 = vadd.xlane.f32.xlu0 %v321_v20 }
 0x1f0   :  { %v323_v3 = vpop.xlane.xlu0 %322 }
 0x1f1   :  { %v324_v13 = vrot.slane %v323_v3, 4 }
 0x1f3   :  { %v325_v22 = vadd.f32 %v324_v13, %v323_v3 }
 0x1f5   :  { %v326_v24 = vrot.slane %v325_v22, 2 }
 0x1f7   :  { %v327_v16 = vadd.f32 %v326_v24, %v325_v22 }
 0x1f9   :  { %v328_v25 = vrot.slane %v327_v16, 1 }
 0x1fb   :  { %v329_v26 = vadd.f32 %v328_v25, %v327_v16 }
 0x1fd   :  { %376 = vpush %v329_v26 }
 0x22e   :  { %s377_s21 = spop %376 }
 0x22f   :  { %v331_v29 = vstv %s377_s21 }
 0x230   :  { %333 = vst.msk [vmem:[#allocation3] sm:$0x1] %vm332_vm3, %v331_v29 }
 0x231   :  { %454 = shalt.err (!%p451_p4)
}
 0x232   :  { %366 = dma.vmem_to_hbm [thread:$0]  %s364_s20, 16, %s762_s5, [#allocation4]  }
 0x233   :  { %463 = dma.done.wait [#allocation4], 16  }
 0x234   :  { %464 = vsyncadd [#allocation4], 4294967280 }
 0x235   :  { %374 = vsyncpa [#allocation4], 1 }

</bundles_post_ra>
